<compile_context>
chip_gen: v7x
topology: tpu7x:2x2x1
jax: 0.10.0
libtpu: 0.0.40
codegen_flags: <defaults>
</compile_context>

<pallas_src>
import jax
import jax.numpy as jnp
from jax import lax
from jax.experimental import pallas as pl
from jax.experimental.pallas import tpu as pltpu

# ---------------- synthetic config (mirrors cfg.CAPTURE_SPEC / cfg.DATASET) ---------
BATCH = 2
NUM_VIEWS = 3
NUM_JOINTS = 4
VOX_X, VOX_Y, VOX_Z = 16, 16, 8
MAX_PEOPLE = 3
MIN_SCORE = 0.30

SPACE_SIZE = jnp.array([8000.0, 8000.0, 2000.0], jnp.float32)
SPACE_CENTER = jnp.array([0.0, 0.0, 1000.0], jnp.float32)
VOXELS_PER_AXIS = jnp.array([VOX_X, VOX_Y, VOX_Z], jnp.float32)
SCALE = SPACE_SIZE / (VOXELS_PER_AXIS - 1.0)           # ProposalLayer.scale
BIAS = SPACE_CENTER - SPACE_SIZE / 2.0                 # ProposalLayer.bias


# ---------------- Fused kernel: ProjectLayer + CenterNet heads -----------------------
def _fused_project_center_kernel(hm_ref, w_ref, wz_ref, b_ref, cube_ref, heads_ref):
    # hm_ref:    (1, V, J, XY)  VMEM  multi-view 2D heatmaps (lane-dense XY=X*Y)
    # w_ref:     (3, J)         VMEM  stacked 1x1-conv head weights [heat, bb_w, bb_h]
    # wz_ref:    (Z,)           SMEM  depth profile
    # b_ref:     (3,)           SMEM  head biases [heat, bb_w, bb_h]
    # cube_ref:  (1, J, Z, XY)  VMEM  feature cube output (lane-dense)
    # heads_ref: (1, 3, XY)     VMEM  [sigmoid(heat), bb_w, bb_h] output slab
    feat = jnp.mean(hm_ref[0], axis=0)                      # [J, XY] view-mean projection

    # Depth-profile broadcast + running elementwise max over depth (pure VPU).
    feat_max = None
    for z in range(VOX_Z):
        slab = feat * wz_ref[z]                             # [J, XY], scalar broadcast
        cube_ref[0, :, z, :] = slab
        feat_max = slab if z == 0 else jnp.maximum(feat_max, slab)

    # CenterNet 1x1-conv heads as one small contraction: [3, J] @ [J, XY] -> [3, XY]
    heads = jnp.dot(w_ref[...], feat_max, preferred_element_type=jnp.float32)
    heat = jax.nn.sigmoid(heads[0:1, :] + b_ref[0])         # only heat head is sigmoided
    bb_w = heads[1:2, :] + b_ref[1]
    bb_h = heads[2:3, :] + b_ref[2]
    heads_ref[0] = jnp.concatenate([heat, bb_w, bb_h], axis=0)


# ---------------- glue: NMS 2D + top-k ------------------------------------------------
def nms2d_topk(heatmaps_2d, k):
    b, _, x, y = heatmaps_2d.shape
    pooled = lax.reduce_window(heatmaps_2d, -jnp.inf, lax.max,
                               window_dimensions=(1, 1, 3, 3),
                               window_strides=(1, 1, 1, 1), padding="SAME")
    nms = jnp.where(pooled == heatmaps_2d, heatmaps_2d, 0.0)
    flat = nms.reshape(b, x * y)
    confs, flat_idx = lax.top_k(flat, k)
    idx2d = jnp.stack([flat_idx // y, flat_idx % y], axis=-1)          # (x, y) voxel coords
    return confs, idx2d, flat_idx


# ---------------- full forward --------------------------------------------------------
def human_detection_net_forward(heatmaps, params):
    B, V, J, X, Y = heatmaps.shape
    Z, P = VOX_Z, MAX_PEOPLE
    XY = X * Y

    # layout plumbing (free): lane-dense view of the heatmaps, packed head weights
    heatmaps_flat = heatmaps.reshape(B, V, J, XY)
    w_heads = jnp.concatenate([params["w_hm"][None, :], params["w_bb"]], axis=0)  # [3, J]
    b_heads = jnp.concatenate([params["b_hm"], params["b_bb"]], axis=0)           # [3]

    # 1+2) fused ProjectLayer + CenterNet heads (single pallas_call)
    feature_cubes, heads_2d = pl.pallas_call(
        _fused_project_center_kernel,
        grid=(B,),
        in_specs=[pl.BlockSpec((1, V, J, XY), lambda b: (b, 0, 0, 0)),
                  pl.BlockSpec((3, J), lambda b: (0, 0)),
                  pl.BlockSpec(memory_space=pltpu.MemorySpace.SMEM),
                  pl.BlockSpec(memory_space=pltpu.MemorySpace.SMEM)],
        out_specs=(pl.BlockSpec((1, J, Z, XY), lambda b: (b, 0, 0, 0)),
                   pl.BlockSpec((1, 3, XY), lambda b: (b, 0, 0))),
        out_shape=(jax.ShapeDtypeStruct((B, J, Z, XY), jnp.float32),
                   jax.ShapeDtypeStruct((B, 3, XY), jnp.float32)),
        compiler_params=pltpu.CompilerParams(dimension_semantics=("parallel",)),
    )(heatmaps_flat, w_heads, params["wz"], b_heads)

    heatmaps_2d = heads_2d[:, 0:1, :].reshape(B, 1, X, Y)          # [B, 1, X, Y]
    bbox_flat = jnp.transpose(heads_2d[:, 1:3, :], (0, 2, 1))      # [B, X*Y, 2]

    # 2D NMS + top-k (glue)
    topk_2d_confs, topk_2d_index, topk_flat_idx = nms2d_topk(heatmaps_2d, P)

    match_bbox_preds = jnp.take_along_axis(
        bbox_flat, jnp.broadcast_to(topk_flat_idx[:, :, None], (B, P, 2)), axis=1)

    # gather per-proposal depth columns directly on the lane-dense cube:
    # [B, J, Z, X*Y] -> [B, J, Z, P]
    feature_1d = jnp.take_along_axis(
        feature_cubes,
        jnp.broadcast_to(topk_flat_idx[:, None, None, :], (B, J, Z, P)), axis=3)

    # 3) C2CNet (synthetic 1x1 conv over joint channels) — plain JAX, fuses with gather
    proposal_heatmaps_1d = jax.nn.sigmoid(
        jnp.einsum("bjzp,j->bpz", feature_1d, params["w_1d"]) + params["b_1d"][0])  # [B,P,Z]

    # top-1 along depth (glue)
    topk_1d_confs, topk_1d_index = lax.top_k(proposal_heatmaps_1d, 1)   # [B,P,1]
    topk_index = jnp.concatenate([topk_2d_index, topk_1d_index], axis=2)  # [B,P,3] int32
    topk_confs = topk_2d_confs * topk_1d_confs[..., 0]                    # [B,P]

    # 4) ProposalLayer (eval branch) — plain JAX, fuses with top_k epilogue
    centers = topk_index.astype(jnp.float32) * SCALE.reshape(1, 1, 3) + BIAS.reshape(1, 1, 3)
    matched = (topk_confs > MIN_SCORE).astype(jnp.float32) - 1.0
    proposal_centers = jnp.concatenate(
        [centers, matched[..., None], topk_confs[..., None], match_bbox_preds], axis=-1)

    return heatmaps_2d, proposal_heatmaps_1d, proposal_centers, bbox_flat


# ---------------- deterministic synthetic parameters ---------------------------------
def init_params():
    J, Z = NUM_JOINTS, VOX_Z
    wz = 0.5 + 0.5 * jnp.sin(jnp.linspace(0.0, 3.14159, Z, dtype=jnp.float32))
    return dict(
        wz=wz,                                                               # (Z,)
        w_hm=jnp.linspace(0.2, 1.0, J, dtype=jnp.float32),                   # (J,)
        b_hm=jnp.array([0.1], jnp.float32),                                  # (1,)
        w_bb=(jnp.arange(2 * J, dtype=jnp.float32).reshape(2, J) - J) * 0.05,  # (2, J)
        b_bb=jnp.array([0.3, 0.4], jnp.float32),                             # (2,)
        w_1d=jnp.linspace(1.0, 0.2, J, dtype=jnp.float32),                   # (J,)
        b_1d=jnp.array([-0.05], jnp.float32),                                # (1,)
    )


if __name__ == "__main__":
    key = jax.random.PRNGKey(0)
    heatmaps = jax.random.uniform(
        key, (BATCH, NUM_VIEWS, NUM_JOINTS, VOX_X, VOX_Y), dtype=jnp.float32)
    params = init_params()

    fwd = jax.jit(human_detection_net_forward)
    hm2d, hm1d, centers, bbox = fwd(heatmaps, params)
    jax.block_until_ready((hm2d, hm1d, centers, bbox))

    assert hm2d.shape == (BATCH, 1, VOX_X, VOX_Y)
    assert hm1d.shape == (BATCH, MAX_PEOPLE, VOX_Z)
    assert centers.shape == (BATCH, MAX_PEOPLE, 7)
    assert bbox.shape == (BATCH, VOX_X * VOX_Y, 2)
    print("KERNEL_OK")
</pallas_src>

<mosaic_0001>
module attributes {stable_mosaic.version = 11 : i64} {
  func.func @_fused_project_center_kernel(%arg0: i32, %arg1: memref<1x3x4x256xf32, #tpu.memory_space<vmem>>, %arg2: memref<3x4xf32, #tpu.memory_space<vmem>>, %arg3: memref<8xf32, #tpu.memory_space<smem>>, %arg4: memref<3xf32, #tpu.memory_space<smem>>, %arg5: memref<1x4x8x256xf32, #tpu.memory_space<vmem>>, %arg6: memref<1x3x256xf32, #tpu.memory_space<vmem>>) attributes {dimension_semantics = [#tpu.dimension_semantics<parallel>], iteration_bounds = array<i64: 2>, scalar_prefetch = 0 : i64, scratch_operands = 0 : i64, tpu.core_type = #tpu.core_type<tc>, window_params = [{transform_indices = @transform_0, window_bounds = array<i64: 1, 3, 4, 256>}, {pipeline_mode = #tpu.pipeline_mode<synchronous>, transform_indices = @transform_1, window_bounds = array<i64: 3, 4>}, {transform_indices = @transform_2, window_bounds = array<i64: 8>}, {transform_indices = @transform_3, window_bounds = array<i64: 3>}, {transform_indices = @transform_4, window_bounds = array<i64: 1, 4, 8, 256>}, {transform_indices = @transform_5, window_bounds = array<i64: 1, 3, 256>}]} {
    %c0 = arith.constant 0 : index
    %c0_0 = arith.constant 0 : index
    %c0_1 = arith.constant 0 : index
    %c0_2 = arith.constant 0 : index
    %0 = vector.load %arg1[%c0, %c0_0, %c0_1, %c0_2] : memref<1x3x4x256xf32, #tpu.memory_space<vmem>>, vector<1x3x4x256xf32>
    %1 = vector.shape_cast %0 : vector<1x3x4x256xf32> to vector<3x4x256xf32>
    %cst = arith.constant dense<0.000000e+00> : vector<4x256xf32>
    %2 = vector.multi_reduction <add>, %1, %cst [0] : vector<3x4x256xf32> to vector<4x256xf32>
    %cst_3 = arith.constant 3.000000e+00 : f32
    %3 = vector.broadcast %cst_3 : f32 to vector<4x256xf32>
    %4 = arith.divf %2, %3 : vector<4x256xf32>
    %c0_4 = arith.constant 0 : index
    %5 = memref.load %arg3[%c0_4] : memref<8xf32, #tpu.memory_space<smem>>
    %6 = vector.broadcast %5 : f32 to vector<4x256xf32>
    %7 = arith.mulf %4, %6 : vector<4x256xf32>
    %c0_5 = arith.constant 0 : index
    %c0_6 = arith.constant 0 : index
    %c0_7 = arith.constant 0 : index
    %c0_8 = arith.constant 0 : index
    %8 = vector.load %arg5[%c0_5, %c0_6, %c0_7, %c0_8] : memref<1x4x8x256xf32, #tpu.memory_space<vmem>>, vector<1x4x1x256xf32>
    %9 = vector.shape_cast %8 : vector<1x4x1x256xf32> to vector<4x256xf32>
    %10 = vector.shape_cast %7 : vector<4x256xf32> to vector<1x4x1x256xf32>
    tpu.vector_store %arg5[%c0_5, %c0_6, %c0_7, %c0_8], %10 {strides = array<i32>} : memref<1x4x8x256xf32, #tpu.memory_space<vmem>>, vector<1x4x1x256xf32>,
    %c1 = arith.constant 1 : index
    %11 = memref.load %arg3[%c1] : memref<8xf32, #tpu.memory_space<smem>>
    %12 = vector.broadcast %11 : f32 to vector<4x256xf32>
    %13 = arith.mulf %4, %12 : vector<4x256xf32>
    %c0_9 = arith.constant 0 : index
    %c0_10 = arith.constant 0 : index
    %c1_11 = arith.constant 1 : index
    %c0_12 = arith.constant 0 : index
    %14 = vector.load %arg5[%c0_9, %c0_10, %c1_11, %c0_12] : memref<1x4x8x256xf32, #tpu.memory_space<vmem>>, vector<1x4x1x256xf32>
    %15 = vector.shape_cast %14 : vector<1x4x1x256xf32> to vector<4x256xf32>
    %16 = vector.shape_cast %13 : vector<4x256xf32> to vector<1x4x1x256xf32>
    tpu.vector_store %arg5[%c0_9, %c0_10, %c1_11, %c0_12], %16 {strides = array<i32>} : memref<1x4x8x256xf32, #tpu.memory_space<vmem>>, vector<1x4x1x256xf32>,
    %17 = arith.maximumf %7, %13 : vector<4x256xf32>
    %c2 = arith.constant 2 : index
    %18 = memref.load %arg3[%c2] : memref<8xf32, #tpu.memory_space<smem>>
    %19 = vector.broadcast %18 : f32 to vector<4x256xf32>
    %20 = arith.mulf %4, %19 : vector<4x256xf32>
    %c0_13 = arith.constant 0 : index
    %c0_14 = arith.constant 0 : index
    %c2_15 = arith.constant 2 : index
    %c0_16 = arith.constant 0 : index
    %21 = vector.load %arg5[%c0_13, %c0_14, %c2_15, %c0_16] : memref<1x4x8x256xf32, #tpu.memory_space<vmem>>, vector<1x4x1x256xf32>
    %22 = vector.shape_cast %21 : vector<1x4x1x256xf32> to vector<4x256xf32>
    %23 = vector.shape_cast %20 : vector<4x256xf32> to vector<1x4x1x256xf32>
    tpu.vector_store %arg5[%c0_13, %c0_14, %c2_15, %c0_16], %23 {strides = array<i32>} : memref<1x4x8x256xf32, #tpu.memory_space<vmem>>, vector<1x4x1x256xf32>,
    %24 = arith.maximumf %17, %20 : vector<4x256xf32>
    %c3 = arith.constant 3 : index
    %25 = memref.load %arg3[%c3] : memref<8xf32, #tpu.memory_space<smem>>
    %26 = vector.broadcast %25 : f32 to vector<4x256xf32>
    %27 = arith.mulf %4, %26 : vector<4x256xf32>
    %c0_17 = arith.constant 0 : index
    %c0_18 = arith.constant 0 : index
    %c3_19 = arith.constant 3 : index
    %c0_20 = arith.constant 0 : index
    %28 = vector.load %arg5[%c0_17, %c0_18, %c3_19, %c0_20] : memref<1x4x8x256xf32, #tpu.memory_space<vmem>>, vector<1x4x1x256xf32>
    %29 = vector.shape_cast %28 : vector<1x4x1x256xf32> to vector<4x256xf32>
    %30 = vector.shape_cast %27 : vector<4x256xf32> to vector<1x4x1x256xf32>
    tpu.vector_store %arg5[%c0_17, %c0_18, %c3_19, %c0_20], %30 {strides = array<i32>} : memref<1x4x8x256xf32, #tpu.memory_space<vmem>>, vector<1x4x1x256xf32>,
    %31 = arith.maximumf %24, %27 : vector<4x256xf32>
    %c4 = arith.constant 4 : index
    %32 = memref.load %arg3[%c4] : memref<8xf32, #tpu.memory_space<smem>>
    %33 = vector.broadcast %32 : f32 to vector<4x256xf32>
    %34 = arith.mulf %4, %33 : vector<4x256xf32>
    %c0_21 = arith.constant 0 : index
    %c0_22 = arith.constant 0 : index
    %c4_23 = arith.constant 4 : index
    %c0_24 = arith.constant 0 : index
    %35 = vector.load %arg5[%c0_21, %c0_22, %c4_23, %c0_24] : memref<1x4x8x256xf32, #tpu.memory_space<vmem>>, vector<1x4x1x256xf32>
    %36 = vector.shape_cast %35 : vector<1x4x1x256xf32> to vector<4x256xf32>
    %37 = vector.shape_cast %34 : vector<4x256xf32> to vector<1x4x1x256xf32>
    tpu.vector_store %arg5[%c0_21, %c0_22, %c4_23, %c0_24], %37 {strides = array<i32>} : memref<1x4x8x256xf32, #tpu.memory_space<vmem>>, vector<1x4x1x256xf32>,
    %38 = arith.maximumf %31, %34 : vector<4x256xf32>
    %c5 = arith.constant 5 : index
    %39 = memref.load %arg3[%c5] : memref<8xf32, #tpu.memory_space<smem>>
    %40 = vector.broadcast %39 : f32 to vector<4x256xf32>
    %41 = arith.mulf %4, %40 : vector<4x256xf32>
    %c0_25 = arith.constant 0 : index
    %c0_26 = arith.constant 0 : index
    %c5_27 = arith.constant 5 : index
    %c0_28 = arith.constant 0 : index
    %42 = vector.load %arg5[%c0_25, %c0_26, %c5_27, %c0_28] : memref<1x4x8x256xf32, #tpu.memory_space<vmem>>, vector<1x4x1x256xf32>
    %43 = vector.shape_cast %42 : vector<1x4x1x256xf32> to vector<4x256xf32>
    %44 = vector.shape_cast %41 : vector<4x256xf32> to vector<1x4x1x256xf32>
    tpu.vector_store %arg5[%c0_25, %c0_26, %c5_27, %c0_28], %44 {strides = array<i32>} : memref<1x4x8x256xf32, #tpu.memory_space<vmem>>, vector<1x4x1x256xf32>,
    %45 = arith.maximumf %38, %41 : vector<4x256xf32>
    %c6 = arith.constant 6 : index
    %46 = memref.load %arg3[%c6] : memref<8xf32, #tpu.memory_space<smem>>
    %47 = vector.broadcast %46 : f32 to vector<4x256xf32>
    %48 = arith.mulf %4, %47 : vector<4x256xf32>
    %c0_29 = arith.constant 0 : index
    %c0_30 = arith.constant 0 : index
    %c6_31 = arith.constant 6 : index
    %c0_32 = arith.constant 0 : index
    %49 = vector.load %arg5[%c0_29, %c0_30, %c6_31, %c0_32] : memref<1x4x8x256xf32, #tpu.memory_space<vmem>>, vector<1x4x1x256xf32>
    %50 = vector.shape_cast %49 : vector<1x4x1x256xf32> to vector<4x256xf32>
    %51 = vector.shape_cast %48 : vector<4x256xf32> to vector<1x4x1x256xf32>
    tpu.vector_store %arg5[%c0_29, %c0_30, %c6_31, %c0_32], %51 {strides = array<i32>} : memref<1x4x8x256xf32, #tpu.memory_space<vmem>>, vector<1x4x1x256xf32>,
    %52 = arith.maximumf %45, %48 : vector<4x256xf32>
    %c7 = arith.constant 7 : index
    %53 = memref.load %arg3[%c7] : memref<8xf32, #tpu.memory_space<smem>>
    %54 = vector.broadcast %53 : f32 to vector<4x256xf32>
    %55 = arith.mulf %4, %54 : vector<4x256xf32>
    %c0_33 = arith.constant 0 : index
    %c0_34 = arith.constant 0 : index
    %c7_35 = arith.constant 7 : index
    %c0_36 = arith.constant 0 : index
    %56 = vector.load %arg5[%c0_33, %c0_34, %c7_35, %c0_36] : memref<1x4x8x256xf32, #tpu.memory_space<vmem>>, vector<1x4x1x256xf32>
    %57 = vector.shape_cast %56 : vector<1x4x1x256xf32> to vector<4x256xf32>
    %58 = vector.shape_cast %55 : vector<4x256xf32> to vector<1x4x1x256xf32>
    tpu.vector_store %arg5[%c0_33, %c0_34, %c7_35, %c0_36], %58 {strides = array<i32>} : memref<1x4x8x256xf32, #tpu.memory_space<vmem>>, vector<1x4x1x256xf32>,
    %59 = arith.maximumf %52, %55 : vector<4x256xf32>
    %c0_37 = arith.constant 0 : index
    %c0_38 = arith.constant 0 : index
    %60 = vector.load %arg2[%c0_37, %c0_38] : memref<3x4xf32, #tpu.memory_space<vmem>>, vector<3x4xf32>
    %cst_39 = arith.constant dense<0.000000e+00> : vector<3x256xf32>
    %61 = tpu.matmul %60, %59, %cst_39 {dimension_numbers = #tpu.dot_dimension_numbers<[1], [0], [0], [1], [0, 0, 1, 1], [], []>} : vector<3x4xf32>, vector<4x256xf32>, vector<3x256xf32> -> vector<3x256xf32>
    %62 = vector.extract_strided_slice %61 {offsets = [0, 0], sizes = [1, 256], strides = [1, 1]} : vector<3x256xf32> to vector<1x256xf32>
    %c0_40 = arith.constant 0 : index
    %63 = memref.load %arg4[%c0_40] : memref<3xf32, #tpu.memory_space<smem>>
    %64 = vector.broadcast %63 : f32 to vector<1x256xf32>
    %65 = arith.addf %62, %64 : vector<1x256xf32>
    %66 = arith.negf %65 : vector<1x256xf32>
    %67 = math.exp %66 : vector<1x256xf32>
    %cst_41 = arith.constant 1.000000e+00 : f32
    %68 = vector.broadcast %cst_41 : f32 to vector<1x256xf32>
    %69 = arith.addf %68, %67 : vector<1x256xf32>
    %70 = arith.divf %68, %69 : vector<1x256xf32>
    %71 = vector.extract_strided_slice %61 {offsets = [1, 0], sizes = [1, 256], strides = [1, 1]} : vector<3x256xf32> to vector<1x256xf32>
    %c1_42 = arith.constant 1 : index
    %72 = memref.load %arg4[%c1_42] : memref<3xf32, #tpu.memory_space<smem>>
    %73 = vector.broadcast %72 : f32 to vector<1x256xf32>
    %74 = arith.addf %71, %73 : vector<1x256xf32>
    %75 = vector.extract_strided_slice %61 {offsets = [2, 0], sizes = [1, 256], strides = [1, 1]} : vector<3x256xf32> to vector<1x256xf32>
    %c2_43 = arith.constant 2 : index
    %76 = memref.load %arg4[%c2_43] : memref<3xf32, #tpu.memory_space<smem>>
    %77 = vector.broadcast %76 : f32 to vector<1x256xf32>
    %78 = arith.addf %75, %77 : vector<1x256xf32>
    %79 = tpu.concatenate %70, %74, %78 in 0 : vector<1x256xf32>, vector<1x256xf32>, vector<1x256xf32> -> vector<3x256xf32>
    %c0_44 = arith.constant 0 : index
    %c0_45 = arith.constant 0 : index
    %c0_46 = arith.constant 0 : index
    %80 = vector.load %arg6[%c0_44, %c0_45, %c0_46] : memref<1x3x256xf32, #tpu.memory_space<vmem>>, vector<1x3x256xf32>
    %81 = vector.shape_cast %80 : vector<1x3x256xf32> to vector<3x256xf32>
    %82 = vector.shape_cast %79 : vector<3x256xf32> to vector<1x3x256xf32>
    tpu.vector_store %arg6[%c0_44, %c0_45, %c0_46], %82 {strides = array<i32>} : memref<1x3x256xf32, #tpu.memory_space<vmem>>, vector<1x3x256xf32>,
    return
  }
  func.func @transform_0(%arg0: i32) -> (i32, i32, i32, i32) {
    %c0_i32 = arith.constant 0 : i32
    %c0_i32_0 = arith.constant 0 : i32
    %c0_i32_1 = arith.constant 0 : i32
    %c0_i32_2 = arith.constant 0 : i32
    return %arg0, %c0_i32, %c0_i32_0, %c0_i32_1 : i32, i32, i32, i32
  }
  func.func @transform_1(%arg0: i32) -> (i32, i32) {
    %c0_i32 = arith.constant 0 : i32
    %c0_i32_0 = arith.constant 0 : i32
    %c0_i32_1 = arith.constant 0 : i32
    return %c0_i32, %c0_i32_0 : i32, i32
  }
  func.func @transform_2(%arg0: i32) -> i32 {
    %c0_i32 = arith.constant 0 : i32
    %c0_i32_0 = arith.constant 0 : i32
    return %c0_i32 : i32
  }
  func.func @transform_3(%arg0: i32) -> i32 {
    %c0_i32 = arith.constant 0 : i32
    %c0_i32_0 = arith.constant 0 : i32
    return %c0_i32 : i32
  }
  func.func @transform_4(%arg0: i32) -> (i32, i32, i32, i32) {
    %c0_i32 = arith.constant 0 : i32
    %c0_i32_0 = arith.constant 0 : i32
    %c0_i32_1 = arith.constant 0 : i32
    %c0_i32_2 = arith.constant 0 : i32
    return %arg0, %c0_i32, %c0_i32_0, %c0_i32_1 : i32, i32, i32, i32
  }
  func.func @transform_5(%arg0: i32) -> (i32, i32, i32) {
    %c0_i32 = arith.constant 0 : i32
    %c0_i32_0 = arith.constant 0 : i32
    %c0_i32_1 = arith.constant 0 : i32
    return %arg0, %c0_i32, %c0_i32_0 : i32, i32, i32
  }
}

</mosaic_0001>

<bundles_post_ra>
// kernel: human_detection_net_forward.1
= control target key start
LH: loop header
LB: loop body
LE: loop exit
PB: predicated region body
PF: predicated region fallthrough
CT: control target
= control target key end

     0   :  { %11 = vsyncpa [#allocation3], 0  ;;  %s1388_s0 = inlined_call_operand.vmem [shape: f32[2,3,4,256], index: 0, kind: input, shape index: {}]   ;;  %s1389_s1 = inlined_call_operand.vmem [shape: f32[3,4], index: 1, kind: input, shape index: {}]   ;;  %s1390_s2 = inlined_call_operand.vmem [shape: f32[8], index: 2, kind: input, shape index: {}]   ;;  %s1391_s3 = inlined_call_operand.vmem [shape: f32[3], index: 3, kind: input, shape index: {}]   ;;  %s1392_s4 = inlined_call_operand.vmem [shape: f32[2,4,8,256], index: 4, kind: output, shape index: {0}]   ;;  %s1393_s5 = inlined_call_operand.vmem [shape: f32[2,3,256], index: 5, kind: output, shape index: {1}]  }
   0x1   :  { %12 = vsyncpa [#allocation5], 0  ;;  %s1097_s18 = smov 0  }
   0x2 LB: > { %s1103_s19 = sadd.s32 4294967295, %s1061_s18   ;;  %p913_p0 = scmp.ge.s32.totalorder %s1061_s18, 1  ;;  %s1061_s18 = sphi %s1097_s18, %s18_s18  }
   0x3   : > { %p164_p1 = scmp.lt.s32.totalorder %s1061_s18, 3  ;;  %s180_s22 = sshll.u32 %s1390_s2, 4  ;;  %s181_s22 = int_to_ptr.vmem [resolvable:$true] %s180_s22 }
   0x4   : > { %p1394_p3 = scmp.eq.s32.totalorder %s1103_s19, 0  ;;  %s191_s26 = sshll.u32 %s1391_s3, 4  ;;  %s192_s26 = int_to_ptr.vmem [resolvable:$true] %s191_s26 }
   0x5   : > { %p1110_p2 = pnand %p913_p0, %p164_p1  ;;  %s1017_s28 = scalar_lea.vmem %s181_s22, 16 }
   0x6   : > { %p1018_p6 = scmp.ne.s32.totalorder %s181_s22, %s1017_s28  ;;  %p1025_p10 = scmp.lt.s32.totalorder %s181_s22, %s181_s22 }
   0x7   : > { %s1396_s23 = scalar_select %p1110_p2, 1, 0 }
   0x8   : > { %p983_p4 = pneg %p1110_p2  ;;  %p1026_p11 = scmp.lt.s32.totalorder %s1017_s28, %s1017_s28 }
   0xa   : > { %p1122_p5 = pnand %p1394_p3, %p983_p4  ;;  %p1027_p12 = por %p1026_p11, %p1025_p10 }
   0xc   : > { %p1019_p7 = pneg %p1122_p5 }
   0xe   : > { %p1020_p8 = pnand %p1019_p7, %p1018_p6 }
  0x10   : > { %p1021_p9 = pneg %p1020_p8 }
  0x12   : > { %p1028_p13 = pnand %p1027_p12, %p1021_p9 }
  0x14   : > { %1031 = shalt.err (!%p1028_p13)
}
  0x15   : > { %s1063_s29 = smov [#allocation2]   ;;  %s1032_s30 = scalar_lea.vmem %s192_s26, 16 }
  0x16   : > { %986 = dma.vmem_to_smem (!%p1122_p5), %s181_s22, 16, %s1063_s29, [#allocation3]  }
  0x17   : > { %p1033_p0 = scmp.ne.s32.totalorder %s192_s26, %s1032_s30  ;;  %p1040_p3 = scmp.lt.s32.totalorder %s192_s26, %s192_s26 }
  0x18   : > { %p1041_p2 = scmp.lt.s32.totalorder %s1032_s30, %s1032_s30 }
  0x19   : > { %p1035_p1 = pnand %p1033_p0, %p1019_p7 }
  0x1a   : > { %p1042_p6 = por %p1041_p2, %p1040_p3 }
  0x1b   : > { %p1036_p4 = pneg %p1035_p1 }
  0x1d   : > { %p1043_p8 = pnand %p1042_p6, %p1036_p4 }
  0x1f   : > { %1046 = shalt.err (!%p1043_p8)
}
  0x20   : > { %s1064_s6 = smov [#allocation4]   ;;  %p1398_p9 = scmp.ne.s32.totalorder %s1396_s23, 0 }
  0x21   : > { %989 = dma.vmem_to_smem (!%p1122_p5), %s192_s26, 16, %s1064_s6, [#allocation5]  }
  0x22   : > { %212 = sbr.rel (%p1398_p9) target bundleno = 342 (0x156), region = 36  ;;  %p1399_p10 = scmp.eq.s32.totalorder (!%p1398_p9), %s1103_s19, 0 }
  0x29   : > { %1052 = dma.done.wait (%p1399_p10), [#allocation3], 16   ;;  %p1400_p11 = pmov %p1399_p10 }
  0x2a   : > { %p1401_p7 = pmov %p1399_p10 }
  0x2b   : > { %1054 = vsyncadd (%p1400_p11), [#allocation3], 4294967280 }
  0x2c   : > { %1056 = dma.done.wait (%p1401_p7), [#allocation5], 16   ;;  %p1402_p2 = pmov %p1401_p7 }
  0x2e   : > { %1058 = vsyncadd (%p1402_p2), [#allocation5], 4294967280 }
  0x2f   : > { %222 = sfence }
  0x30   : > { %p250_p3 = scmp.lt.s32.totalorder %s1103_s19, 1  ;;  %s1143_s7 = sld [smem:[#allocation2]]  ;;  %v1065_v0 = vmov 0.0   ;;  %vm277_vm0 = vcmask 1043456   ;;  %v1066_v1 = vmov 1966171168   ;;  %v301_v3 = vlaneseq }
  0x31   : > { %759 = vmatprep.mubr.f32.mxu0 %v1065_v0  ;;  %s1148_s8 = sld [smem:[#allocation2 + $0x1]]  ;;  %s1150_s9 = sld [smem:[#allocation2 + $0x2]]  ;;  %v299_v2 = vunpack.c.l.s4 %v1066_v1  ;;  %vm685_vm2 = vcmask 31744   ;;  %vm790_vm3 = vcmask 1040384   ;;  %vm793_vm4 = vcmask 1041408  }
  0x32   : > { %s1406_s19 = smov (!%p250_p3, %s1103_s19), 1  ;;  %s1153_s11 = sld [smem:[#allocation2 + $0x3]]  ;;  %v302_v14 = vshrl.u32 %v301_v3, 7  ;;  %vm1180_vm1 = vcmp.lt.s32.totalorder %v301_v3, 256 }
  0x33   : > { %s974_s10 = smul.u32 24, %s1406_s19  ;;  %s1155_s12 = sld [smem:[#allocation2 + $0x4]]  ;;  %v300_v13 = vunpack.c.0.s8 %v299_v2 }
  0x34   : > { %s1157_s13 = sld [smem:[#allocation2 + $0x5]]  ;;  %s1162_s17 = sld [smem:[#allocation2 + $0x6]] }
  0x35   : > { %s254_s16 = scalar_lea.vmem %s1388_s0, %s974_s10  ;;  %s1164_s20 = sld [smem:[#allocation2 + $0x7]]  ;;  %v1178_v27 = vsub.s32 %v300_v13, %v302_v14 }
  0x36   : > { %v265_v4 = vld [vmem:[%s254_s16] sm:$0xff]  ;;  %v266_v5 = vld [vmem:[%s254_s16 + $0x8] sm:$0xff]  ;;  %v267_v6 = vld [vmem:[%s254_s16 + $0x10] sm:$0xff]  ;;  %v292_v21 = vstv %s1143_s7  ;;  %s972_s21 = sshll.u32 %s1406_s19, 6  ;;  %s766_s27 = sld [smem:[#allocation4]] }
  0x37   : > { %v271_v7 = vcombine.high %v265_v4, %v265_v4  ;;  %v272_v8 = vcombine.high %v266_v5, %v266_v5  ;;  %v273_v9 = vcombine.high %v267_v6, %v267_v6  ;;  %v278_v10 = vsel %vm277_vm0, %v265_v4, 0.0  ;;  %s1236_s24 = scalar_lea.vmem %s1392_s4, %s972_s21  ;;  %s968_s28 = sld [smem:[#allocation4 + $0x1]] }
  0x38   : > { %v279_v11 = vsel %vm277_vm0, %v266_v5, 0.0  ;;  %v281_v12 = vsel %vm277_vm0, %v267_v6, 0.0  ;;  %v342_v23 = vstv %s1148_s8  ;;  %v391_v24 = vstv %s1150_s9  ;;  %s969_s29 = sld [smem:[#allocation4 + $0x2]]  ;;  %s973_s30 = sshll.u32 %s1406_s19, 3 }
  0x39   : > { %v280_v15 = vadd.f32 %v279_v11, %v278_v10  ;;  %v283_v16 = vsel %vm277_vm0, %v271_v7, 0.0  ;;  %v284_v17 = vsel %vm277_vm0, %v272_v8, 0.0  ;;  %v286_v18 = vsel %vm277_vm0, %v273_v9, 0.0  ;;  %s264_s8 = scalar_lea.vmem %s1393_s5, %s973_s30 }
  0x3a   : > { %v285_v19 = vadd.f32 %v284_v17, %v283_v16  ;;  %v440_v25 = vstv %s1153_s11  ;;  %v489_v29 = vstv %s1155_s12  ;;  %v538_v31 = vstv %s1157_s13 }
  0x3b   : > { %v282_v20 = vadd.f32 %v281_v12, %v280_v15  ;;  %v587_v32 = vstv %s1162_s17  ;;  %v636_v33 = vstv %s1164_s20 }
  0x3c   : > { %v287_v22 = vadd.f32 %v286_v18, %v285_v19 }
  0x3d   : > { %v1176_v26 = vmul.f32 0.33333334, %v282_v20 }
  0x3e   : > { %v1185_v30 = vmul.f32 0.33333334, %v287_v22 }
  0x3f   : > { %v1191_v34 = vmul.f32 %v292_v21, %v1176_v26  ;;  %v1194_v35 = vmul.f32 %v342_v23, %v1176_v26  ;;  %v1197_v36 = vmul.f32 %v391_v24, %v1176_v26  ;;  %v1200_v37 = vmul.f32 %v440_v25, %v1176_v26 }
  0x40   : > { %v294_v38 = vmul.f32 %v292_v21, %v1185_v30  ;;  %v344_v39 = vmul.f32 %v342_v23, %v1185_v30  ;;  %v393_v40 = vmul.f32 %v391_v24, %v1185_v30  ;;  %v1206_v41 = vmul.f32 %v440_v25, %v1185_v30 }
  0x41   : > { %v1209_v42 = vmul.f32 %v489_v29, %v1176_v26  ;;  %v491_v43 = vmul.f32 %v489_v29, %v1185_v30  ;;  %v1213_v44 = vmul.f32 %v538_v31, %v1176_v26  ;;  %v1216_v45 = vmul.f32 %v538_v31, %v1185_v30 }
  0x42   : > { %v297_v46 = vcombine.low %v1191_v34, %v294_v38  ;;  %v347_v47 = vcombine.low %v1194_v35, %v344_v39  ;;  %v389_v48 = vmax.f32 %v294_v38, %v344_v39  ;;  %v396_v49 = vcombine.low %v1197_v36, %v393_v40 }
  0x43   : > { %v445_v50 = vcombine.low %v1200_v37, %v1206_v41  ;;  %v494_v51 = vcombine.low %v1209_v42, %v491_v43  ;;  %v543_v52 = vcombine.low %v1213_v44, %v1216_v45  ;;  %v1228_v53 = vmul.f32 %v587_v32, %v1176_v26 }
  0x44   : > { %v304_v54 = vrot.slane %v297_v46, %v1178_v27  ;;  %v354_v55 = vrot.slane %v347_v47, %v1178_v27  ;;  %v403_v56 = vrot.slane %v396_v49, %v1178_v27  ;;  %v438_v57 = vmax.f32 %v389_v48, %v393_v40 }
  0x45   : > { %v452_v58 = vrot.slane %v445_v50, %v1178_v27  ;;  %v501_v59 = vrot.slane %v494_v51, %v1178_v27  ;;  %v550_v60 = vrot.slane %v543_v52, %v1178_v27  ;;  %v1242_v61 = vmul.f32 %v587_v32, %v1185_v30 }
  0x46   : > { %v305_v62 = vcombine.high %v304_v54, %v304_v54  ;;  %v312_v63 = vrot.slane %v304_v54, %v1178_v27  ;;  %v355_v0 = vcombine.high %v354_v55, %v354_v55  ;;  %v362_v1 = vrot.slane %v354_v55, %v1178_v27 }
  0x47   : > { %v404_v2 = vcombine.high %v403_v56, %v403_v56  ;;  %v411_v3 = vrot.slane %v403_v56, %v1178_v27  ;;  %v453_v4 = vcombine.high %v452_v58, %v452_v58  ;;  %v460_v5 = vrot.slane %v452_v58, %v1178_v27 }
  0x48   : > { %v319_v6 = vrot.slane %v305_v62, %v1178_v27  ;;  %v320_v7 = vcombine.high %v312_v63, %v312_v63  ;;  %330 = vst.msk [vmem:[%s1236_s24] ss:$8 sm:$0x3] %vm1180_vm1, %v312_v63  ;;  %v369_v8 = vrot.slane %v355_v0, %v1178_v27  ;;  %v370_v9 = vcombine.high %v362_v1, %v362_v1 }
  0x49   : > { %929 = vst.msk [vmem:[%s1236_s24 + $0x1] ss:$8 sm:$0x3] %vm1180_vm1, %v362_v1  ;;  %v418_v10 = vrot.slane %v404_v2, %v1178_v27  ;;  %v419_v11 = vcombine.high %v411_v3, %v411_v3  ;;  %934 = vst.msk [vmem:[%s1236_s24 + $0x2] ss:$8 sm:$0x3] %vm1180_vm1, %v411_v3  ;;  %v467_v12 = vrot.slane %v453_v4, %v1178_v27  ;;  %v783_v4 = vstv %s968_s28 }
  0x4a   : > { %v468_v13 = vcombine.high %v460_v5, %v460_v5  ;;  %939 = vst.msk [vmem:[%s1236_s24 + $0x3] ss:$8 sm:$0x3] %vm1180_vm1, %v460_v5  ;;  %v321_v14 = vcombine.high %v319_v6, %v319_v6  ;;  %925 = vst.msk [vmem:[%s1236_s24 + $0x10] ss:$8 sm:$0x3] %vm1180_vm1, %v319_v6  ;;  %v371_v15 = vcombine.high %v369_v8, %v369_v8  ;;  %v787_v5 = vstv %s969_s29 }
  0x4b   : > { %926 = vst.msk [vmem:[%s1236_s24 + $0x20] ss:$8 sm:$0x3] %vm1180_vm1, %v320_v7  ;;  %930 = vst.msk [vmem:[%s1236_s24 + $0x11] ss:$8 sm:$0x3] %vm1180_vm1, %v369_v8  ;;  %v487_v16 = vmax.f32 %v438_v57, %v1206_v41  ;;  %v502_v17 = vcombine.high %v501_v59, %v501_v59  ;;  %v420_v18 = vcombine.high %v418_v10, %v418_v10 }
  0x4c   : > { %931 = vst.msk [vmem:[%s1236_s24 + $0x21] ss:$8 sm:$0x3] %vm1180_vm1, %v370_v9  ;;  %935 = vst.msk [vmem:[%s1236_s24 + $0x12] ss:$8 sm:$0x3] %vm1180_vm1, %v418_v10  ;;  %v469_v19 = vcombine.high %v467_v12, %v467_v12  ;;  %v509_v20 = vrot.slane %v501_v59, %v1178_v27  ;;  %v551_v21 = vcombine.high %v550_v60, %v550_v60 }
  0x4d   : > { %936 = vst.msk [vmem:[%s1236_s24 + $0x22] ss:$8 sm:$0x3] %vm1180_vm1, %v419_v11  ;;  %940 = vst.msk [vmem:[%s1236_s24 + $0x13] ss:$8 sm:$0x3] %vm1180_vm1, %v467_v12  ;;  %v516_v22 = vrot.slane %v502_v17, %v1178_v27  ;;  %v536_v23 = vmax.f32 %v487_v16, %v491_v43  ;;  %v558_v24 = vrot.slane %v550_v60, %v1178_v27  ;;  %v767_v60 = vstv %s766_s27 }
  0x4e   : > { %941 = vst.msk [vmem:[%s1236_s24 + $0x23] ss:$8 sm:$0x3] %vm1180_vm1, %v468_v13  ;;  %927 = vst.msk [vmem:[%s1236_s24 + $0x30] ss:$8 sm:$0x3] %vm1180_vm1, %v321_v14  ;;  %v592_v25 = vcombine.low %v1228_v53, %v1242_v61  ;;  %v517_v29 = vcombine.high %v509_v20, %v509_v20  ;;  %v565_v31 = vrot.slane %v551_v21, %v1178_v27 }
  0x4f   : > { %932 = vst.msk [vmem:[%s1236_s24 + $0x31] ss:$8 sm:$0x3] %vm1180_vm1, %v371_v15  ;;  %937 = vst.msk [vmem:[%s1236_s24 + $0x32] ss:$8 sm:$0x3] %vm1180_vm1, %v420_v18  ;;  %v637_v32 = vmul.f32 %v636_v33, %v1176_v26  ;;  %v638_v38 = vmul.f32 %v636_v33, %v1185_v30  ;;  %v518_v39 = vcombine.high %v516_v22, %v516_v22 }
  0x50   : > { %942 = vst.msk [vmem:[%s1236_s24 + $0x33] ss:$8 sm:$0x3] %vm1180_vm1, %v469_v19  ;;  %944 = vst.msk [vmem:[%s1236_s24 + $0x4] ss:$8 sm:$0x3] %vm1180_vm1, %v509_v20  ;;  %v566_v40 = vcombine.high %v558_v24, %v558_v24  ;;  %v585_v41 = vmax.f32 %v536_v23, %v1216_v45  ;;  %v599_v43 = vrot.slane %v592_v25, %v1178_v27 }
  0x51   : > { %945 = vst.msk [vmem:[%s1236_s24 + $0x14] ss:$8 sm:$0x3] %vm1180_vm1, %v516_v22  ;;  %949 = vst.msk [vmem:[%s1236_s24 + $0x5] ss:$8 sm:$0x3] %vm1180_vm1, %v558_v24  ;;  %v567_v26 = vcombine.high %v565_v31, %v565_v31  ;;  %v641_v30 = vcombine.low %v637_v32, %v638_v38  ;;  %v388_v33 = vmax.f32 %v1191_v34, %v1194_v35 }
  0x52   : > { %946 = vst.msk [vmem:[%s1236_s24 + $0x24] ss:$8 sm:$0x3] %vm1180_vm1, %v517_v29  ;;  %950 = vst.msk [vmem:[%s1236_s24 + $0x15] ss:$8 sm:$0x3] %vm1180_vm1, %v565_v31  ;;  %v600_v45 = vcombine.high %v599_v43, %v599_v43  ;;  %v607_v46 = vrot.slane %v599_v43, %v1178_v27  ;;  %v634_v47 = vmax.f32 %v585_v41, %v1242_v61 }
  0x53   : > { %947 = vst.msk [vmem:[%s1236_s24 + $0x34] ss:$8 sm:$0x3] %vm1180_vm1, %v518_v39  ;;  %951 = vst.msk [vmem:[%s1236_s24 + $0x25] ss:$8 sm:$0x3] %vm1180_vm1, %v566_v40  ;;  %v648_v48 = vrot.slane %v641_v30, %v1178_v27  ;;  %v437_v34 = vmax.f32 %v388_v33, %v1197_v36 }
  0x54   : > { %952 = vst.msk [vmem:[%s1236_s24 + $0x35] ss:$8 sm:$0x3] %vm1180_vm1, %v567_v26  ;;  %v614_v35 = vrot.slane %v600_v45, %v1178_v27  ;;  %v615_v49 = vcombine.high %v607_v46, %v607_v46  ;;  %954 = vst.msk [vmem:[%s1236_s24 + $0x6] ss:$8 sm:$0x3] %vm1180_vm1, %v607_v46  ;;  %v683_v50 = vmax.f32 %v634_v47, %v638_v38 }
  0x55   : > { %v649_v51 = vcombine.high %v648_v48, %v648_v48  ;;  %v656_v52 = vrot.slane %v648_v48, %v1178_v27  ;;  %v486_v54 = vmax.f32 %v437_v34, %v1200_v37 }
  0x56   : > { %v616_v55 = vcombine.high %v614_v35, %v614_v35  ;;  %955 = vst.msk [vmem:[%s1236_s24 + $0x16] ss:$8 sm:$0x3] %vm1180_vm1, %v614_v35  ;;  %956 = vst.msk [vmem:[%s1236_s24 + $0x26] ss:$8 sm:$0x3] %vm1180_vm1, %v615_v49  ;;  %963 = vmatprep.subr.msk.mxu0 %vm277_vm0, %v683_v50 }
  0x57   : > { %v663_v36 = vrot.slane %v649_v51, %v1178_v27  ;;  %v664_v56 = vcombine.high %v656_v52, %v656_v52  ;;  %959 = vst.msk [vmem:[%s1236_s24 + $0x7] ss:$8 sm:$0x3] %vm1180_vm1, %v656_v52  ;;  %v535_v57 = vmax.f32 %v486_v54, %v1209_v42  ;;  %v684_v42 = vld [vmem:[%s1389_s1] sm:$0x7] }
  0x58   : > { %957 = vst.msk [vmem:[%s1236_s24 + $0x36] ss:$8 sm:$0x3] %vm1180_vm1, %v616_v55 }
  0x59   : > { %v665_v37 = vcombine.high %v663_v36, %v663_v36  ;;  %960 = vst.msk [vmem:[%s1236_s24 + $0x17] ss:$8 sm:$0x3] %vm1180_vm1, %v663_v36  ;;  %961 = vst.msk [vmem:[%s1236_s24 + $0x27] ss:$8 sm:$0x3] %vm1180_vm1, %v664_v56  ;;  %v584_v58 = vmax.f32 %v535_v57, %v1213_v44 }
  0x5b   : > { %962 = vst.msk [vmem:[%s1236_s24 + $0x37] ss:$8 sm:$0x3] %vm1180_vm1, %v665_v37  ;;  %v633_v27 = vmax.f32 %v584_v58, %v1228_v53 }
  0x5d   : > { %v682_v59 = vmax.f32 %v633_v27, %v637_v32 }
  0x5f   : > { %964 = vmatpush1.msk.msra.mxu0 %vm277_vm0, %v682_v59 }
  0x60   : > { %965 = vmatmul.mubr.msk.f32.vlgmr.msra.gmra.mrb[0].mxu0 %vm685_vm2, %v684_v42 }
 0x133   : > { %v761_v61 = vpop.f32.mrb[0].mxu0 }
 0x134   : > { %v763_v62 = vpop.f32.mrb[1].mxu0  ;;  %v768_v63 = vadd.f32 %v767_v60, %v761_v61  ;;  %v784_v6 = vadd.f32 %v783_v4, %v761_v61  ;;  %v788_v9 = vadd.f32 %v787_v5, %v761_v61 }
 0x135   : > { %v769_v44 = vadd.f32 %v767_v60, %v763_v62  ;;  %v785_v8 = vadd.f32 %v783_v4, %v763_v62  ;;  %v789_v11 = vadd.f32 %v787_v5, %v763_v62 }
 0x136   : > { %v966_v0 = vmul.f32 -1.442695, %v768_v63 }
 0x137   : > { %v967_v28 = vmul.f32 -1.442695, %v769_v44 }
 0x138   : > { %1009 = vpow2.f32 %v966_v0 }
 0x139   : > { %1011 = vpow2.f32 %v967_v28 }
 0x142   : > { %v1010_v53 = vpop.eup %1009 }
 0x143   : > { %v1012_v1 = vpop.eup %1011  ;;  %v776_v2 = vadd.f32 1.0, %v1010_v53 }
 0x144   : > { %v777_v3 = vadd.f32 1.0, %v1012_v1 }
 0x145   : > { %1013 = vrcp.f32 %v776_v2 }
 0x146   : > { %1015 = vrcp.f32 %v777_v3 }
 0x14f   : > { %v1014_v7 = vpop.eup %1013 }
 0x150   : > { %v1016_v10 = vpop.eup %1015  ;;  %v791_v12 = vsel %vm790_vm3, %v1014_v7, %v784_v6 }
 0x151   : > { %v792_v13 = vsel %vm790_vm3, %v1016_v10, %v785_v8  ;;  %v794_v14 = vsel %vm793_vm4, %v791_v12, %v788_v9 }
 0x152   : > { %v795_v15 = vsel %vm793_vm4, %v792_v13, %v789_v11 }
 0x153   : > { %v798_v16 = vcombine.low %v794_v14, %v795_v15 }
 0x155   : > { %800 = vst [vmem:[%s264_s8] sm:$0x77] %v798_v16 }
 0x156 PF: > { %s18_s18 = sadd.s32 1, %s1061_s18  }
 0x157   : > { %p15_p5 = scmp.ge.s32.totalorder %s18_s18, 4  }
 0x159   :  { %17 = sbr.rel (!%p15_p5) target bundleno = 2 (0x2), region = 118 }
 0x160   :  { %838 = vsyncpa [#allocation3], 1 }
 0x161   :  { %840 = vsyncpa [#allocation3 + $0x1], 1 }
 0x162   :  { %841 = vsyncpa [#allocation5], 1 }

</bundles_post_ra>
